<compile_context>
chip_gen: v7x
topology: tpu7x:2x2x1
jax: 0.10.0
libtpu: 0.0.40
codegen_flags: <defaults>
</compile_context>

<pallas_src>
import jax
import jax.numpy as jnp
from jax.experimental import pallas as pl
from jax.experimental.pallas import tpu as pltpu


# ----------------------------- model config ---------------------------------
SERVER_NUM = 2
USER_NUM = 4
HIDDEN_DIM = 32
LAYER_NUM = 5

SU = SERVER_NUM * USER_NUM          # server_num * user_num      (8)
IN_DIM = SU * 6                     # input_size                 (48)
OUT_DIM = SU * 3                    # out_dim                    (24)
PAIR_COLS = SU * 2                  # columns with pairwise softmax (16)

LANE = 128                          # TPU lane width


def _round_up(n, m):
    return ((n + m - 1) // m) * m


# Packed parameter-slab layout (rows of a (SLAB_ROWS, 128) f32 array).
# Every weight-matrix section starts on an 8-row (sublane) boundary.
ROW_W_IN = 0                                        # (48, 128)  lane-padded
ROW_B_IN = ROW_W_IN + IN_DIM                        # (1, 128)
ROW_WH = _round_up(ROW_B_IN + 1, 8)                 # LAYER_NUM x (128, 128)
ROW_BH = ROW_WH + LAYER_NUM * LANE                  # LAYER_NUM x (1, 128)
ROW_W_OUT = _round_up(ROW_BH + LAYER_NUM, 8)        # (128, 128)
ROW_B_OUT = ROW_W_OUT + LANE                        # (1, 128)
SLAB_ROWS = _round_up(ROW_B_OUT + 1, 8)             # 840


# ------------------------------- kernel -------------------------------------
def mtfnn_kernel(x_ref, p_ref, x1_ref, x2_ref):
    # Input layer: [B, 48] @ [48, 128]. Lanes >= HIDDEN_DIM of h are exact
    # zeros (zero-padded weight columns / bias) and stay zero through the
    # residual layers because the padded rows/cols of every layer are zero.
    w_in = p_ref[ROW_W_IN:ROW_W_IN + IN_DIM, :]
    b_in = p_ref[ROW_B_IN:ROW_B_IN + 1, :]
    h = jnp.dot(x_ref[...], w_in, preferred_element_type=jnp.float32) + b_in

    # Residual hidden layers: h = h + relu(h W + b), full-lane contraction
    # (weights are zero-padded to (128, 128)) -> no per-layer lane slices.
    for l in range(LAYER_NUM):
        wh = p_ref[ROW_WH + l * LANE:ROW_WH + (l + 1) * LANE, :]
        bh = p_ref[ROW_BH + l:ROW_BH + l + 1, :]
        z = jnp.dot(h, wh, preferred_element_type=jnp.float32) + bh
        h = h + jnp.maximum(z, 0.0)

    # Output layer.  The pairwise-softmax fold is pre-applied to the weights
    # (see prepare_params): columns < PAIR_COLS hold partner-difference logits,
    # columns in [PAIR_COLS, OUT_DIM) hold the raw logits.
    w_out = p_ref[ROW_W_OUT:ROW_W_OUT + LANE, :]
    b_out = p_ref[ROW_B_OUT:ROW_B_OUT + 1, :]
    logits = jnp.dot(h, w_out, preferred_element_type=jnp.float32) + b_out

    # Fused epilogue: numerically-stable sigmoid via tanh on the EUP.
    # sigmoid(x) == 0.5 * (1 + tanh(x / 2));  pairwise softmax == sigmoid of
    # the partner difference, the plain sigmoid head uses the same op.
    sig = 0.5 * (jnp.tanh(0.5 * logits) + 1.0)

    x1_ref[...] = sig[:, :PAIR_COLS]
    x2_ref[...] = sig[:, PAIR_COLS:OUT_DIM]


# ------------------------------ param prep -----------------------------------
def prepare_params(params):
    """Fold the pairwise softmax into the output layer and pack all parameters
    into one (SLAB_ROWS, 128) f32 slab.  Call once; reuse every forward.
    Padding regions are exact zeros (required for the zero-lane invariant)."""
    w_in, b_in, wh, bh, w_out, b_out = params

    # softmax([a, b]) == [sigmoid(a-b), sigmoid(b-a)] -> subtract the partner
    # column of w_out / b_out for the first PAIR_COLS outputs.
    idx = jnp.arange(OUT_DIM)
    partner = jnp.where(idx < PAIR_COLS, idx ^ 1, idx)
    pair_mask = (idx < PAIR_COLS).astype(w_out.dtype)
    w_eff = w_out - pair_mask[None, :] * w_out[:, partner]
    b_eff = b_out - pair_mask * b_out[partner]

    slab = jnp.zeros((SLAB_ROWS, LANE), jnp.float32)
    slab = slab.at[ROW_W_IN:ROW_W_IN + IN_DIM, :HIDDEN_DIM].set(
        w_in.astype(jnp.float32))
    slab = slab.at[ROW_B_IN, :HIDDEN_DIM].set(b_in.astype(jnp.float32))
    for l in range(LAYER_NUM):
        slab = slab.at[ROW_WH + l * LANE:ROW_WH + l * LANE + HIDDEN_DIM,
                       :HIDDEN_DIM].set(wh[l].astype(jnp.float32))
        slab = slab.at[ROW_BH + l, :HIDDEN_DIM].set(bh[l].astype(jnp.float32))
    slab = slab.at[ROW_W_OUT:ROW_W_OUT + HIDDEN_DIM, :OUT_DIM].set(
        w_eff.astype(jnp.float32))
    slab = slab.at[ROW_B_OUT, :OUT_DIM].set(b_eff.astype(jnp.float32))
    return slab


# ------------------------------ forward --------------------------------------
def mtfnn_forward(x, param_slab):
    """x: [B, IN_DIM] float32.  Returns (x1 [B, SU, 2] softmaxed, x2 [B, SU])."""
    B = x.shape[0]
    vmem_spec = pl.BlockSpec(memory_space=pltpu.MemorySpace.VMEM)

    # Advisory cost estimate using the actual padded transfer / MXU sizes.
    flops = 2 * B * (IN_DIM * LANE + LAYER_NUM * LANE * LANE + LANE * LANE)
    bytes_accessed = 4 * (B * IN_DIM + SLAB_ROWS * LANE + B * (PAIR_COLS + SU))
    transcendentals = B * LANE

    x1_flat, x2 = pl.pallas_call(
        mtfnn_kernel,
        out_shape=(jax.ShapeDtypeStruct((B, PAIR_COLS), jnp.float32),
                   jax.ShapeDtypeStruct((B, SU), jnp.float32)),
        in_specs=[vmem_spec, vmem_spec],
        out_specs=(vmem_spec, vmem_spec),
        cost_estimate=pl.CostEstimate(
            flops=flops,
            transcendentals=transcendentals,
            bytes_accessed=bytes_accessed),
    )(x.astype(jnp.float32), param_slab)

    # Contiguous last-dim split -> bitcast in XLA, no copy.
    x1 = x1_flat.reshape(B, SU, 2)
    return x1, x2


mtfnn_forward_jit = jax.jit(mtfnn_forward)


# --------------------------- reference (pure JAX) -----------------------------
def mtfnn_reference(x, params):
    w_in, b_in, wh, bh, w_out, b_out = params
    B = x.shape[0]
    h = x @ w_in + b_in
    for l in range(LAYER_NUM):
        h = h + jax.nn.relu(h @ wh[l] + bh[l])
    out = h @ w_out + b_out
    x1 = jax.nn.softmax(out[:, :PAIR_COLS].reshape(B, -1, 2), axis=-1)
    x2 = jax.nn.sigmoid(out[:, PAIR_COLS:])
    return x1, x2


# --------------------------------- main ---------------------------------------
def init_params(key):
    ks = jax.random.split(key, 6)
    scale_in = 1.0 / jnp.sqrt(IN_DIM)
    scale_h = 1.0 / jnp.sqrt(HIDDEN_DIM)
    w_in = jax.random.uniform(ks[0], (IN_DIM, HIDDEN_DIM), jnp.float32,
                              -scale_in, scale_in)
    b_in = jax.random.uniform(ks[1], (HIDDEN_DIM,), jnp.float32,
                              -scale_in, scale_in)
    wh = jax.random.uniform(ks[2], (LAYER_NUM, HIDDEN_DIM, HIDDEN_DIM),
                            jnp.float32, -scale_h, scale_h)
    bh = jax.random.uniform(ks[3], (LAYER_NUM, HIDDEN_DIM), jnp.float32,
                            -scale_h, scale_h)
    w_out = jax.random.uniform(ks[4], (HIDDEN_DIM, OUT_DIM), jnp.float32,
                               -scale_h, scale_h)
    b_out = jax.random.uniform(ks[5], (OUT_DIM,), jnp.float32,
                               -scale_h, scale_h)
    return w_in, b_in, wh, bh, w_out, b_out


if __name__ == "__main__":
    key = jax.random.PRNGKey(0)
    k_param, k_x = jax.random.split(key)

    params = init_params(k_param)
    param_slab = jax.block_until_ready(prepare_params(params))

    batch = 2
    x = jax.random.normal(k_x, (batch, IN_DIM), jnp.float32)

    x1, x2 = mtfnn_forward_jit(x, param_slab)
    x1 = jax.block_until_ready(x1)
    x2 = jax.block_until_ready(x2)

    x1_ref, x2_ref = mtfnn_reference(x, params)
    assert x1.shape == (batch, SU, 2) and x2.shape == (batch, SU)
    assert jnp.allclose(x1, x1_ref, atol=1e-5, rtol=1e-5)
    assert jnp.allclose(x2, x2_ref, atol=1e-5, rtol=1e-5)

    print("KERNEL_OK")
</pallas_src>

<mosaic_0001>
module attributes {stable_mosaic.version = 11 : i64} {
  func.func @mtfnn_kernel(%arg0: memref<2x48xf32, #tpu.memory_space<vmem>>, %arg1: memref<840x128xf32, #tpu.memory_space<vmem>>, %arg2: memref<2x16xf32, #tpu.memory_space<vmem>>, %arg3: memref<2x8xf32, #tpu.memory_space<vmem>>) attributes {dimension_semantics = [], scalar_prefetch = 0 : i64, scratch_operands = 0 : i64, tpu.core_type = #tpu.core_type<tc>} {
    %c0 = arith.constant 0 : index
    %c0_0 = arith.constant 0 : index
    %0 = vector.load %arg1[%c0, %c0_0] : memref<840x128xf32, #tpu.memory_space<vmem>>, vector<48x128xf32>
    %c48 = arith.constant 48 : index
    %c0_1 = arith.constant 0 : index
    %1 = vector.load %arg1[%c48, %c0_1] : memref<840x128xf32, #tpu.memory_space<vmem>>, vector<1x128xf32>
    %c0_2 = arith.constant 0 : index
    %c0_3 = arith.constant 0 : index
    %2 = vector.load %arg0[%c0_2, %c0_3] : memref<2x48xf32, #tpu.memory_space<vmem>>, vector<2x48xf32>
    %cst = arith.constant dense<0.000000e+00> : vector<2x128xf32>
    %3 = tpu.matmul %2, %0, %cst {dimension_numbers = #tpu.dot_dimension_numbers<[1], [0], [0], [1], [0, 0, 1, 1], [], []>} : vector<2x48xf32>, vector<48x128xf32>, vector<2x128xf32> -> vector<2x128xf32>
    %4 = vector.broadcast %1 : vector<1x128xf32> to vector<2x128xf32>
    %5 = arith.addf %3, %4 : vector<2x128xf32>
    %c56 = arith.constant 56 : index
    %c0_4 = arith.constant 0 : index
    %6 = vector.load %arg1[%c56, %c0_4] : memref<840x128xf32, #tpu.memory_space<vmem>>, vector<128x128xf32>
    %c696 = arith.constant 696 : index
    %c0_5 = arith.constant 0 : index
    %7 = vector.load %arg1[%c696, %c0_5] : memref<840x128xf32, #tpu.memory_space<vmem>>, vector<1x128xf32>
    %cst_6 = arith.constant dense<0.000000e+00> : vector<2x128xf32>
    %8 = tpu.matmul %5, %6, %cst_6 {dimension_numbers = #tpu.dot_dimension_numbers<[1], [0], [0], [1], [0, 0, 1, 1], [], []>} : vector<2x128xf32>, vector<128x128xf32>, vector<2x128xf32> -> vector<2x128xf32>
    %9 = vector.broadcast %7 : vector<1x128xf32> to vector<2x128xf32>
    %10 = arith.addf %8, %9 : vector<2x128xf32>
    %cst_7 = arith.constant 0.000000e+00 : f32
    %11 = vector.broadcast %cst_7 : f32 to vector<2x128xf32>
    %12 = arith.maximumf %10, %11 : vector<2x128xf32>
    %13 = arith.addf %5, %12 : vector<2x128xf32>
    %c184 = arith.constant 184 : index
    %c0_8 = arith.constant 0 : index
    %14 = vector.load %arg1[%c184, %c0_8] : memref<840x128xf32, #tpu.memory_space<vmem>>, vector<128x128xf32>
    %c697 = arith.constant 697 : index
    %c0_9 = arith.constant 0 : index
    %15 = vector.load %arg1[%c697, %c0_9] : memref<840x128xf32, #tpu.memory_space<vmem>>, vector<1x128xf32>
    %cst_10 = arith.constant dense<0.000000e+00> : vector<2x128xf32>
    %16 = tpu.matmul %13, %14, %cst_10 {dimension_numbers = #tpu.dot_dimension_numbers<[1], [0], [0], [1], [0, 0, 1, 1], [], []>} : vector<2x128xf32>, vector<128x128xf32>, vector<2x128xf32> -> vector<2x128xf32>
    %17 = vector.broadcast %15 : vector<1x128xf32> to vector<2x128xf32>
    %18 = arith.addf %16, %17 : vector<2x128xf32>
    %cst_11 = arith.constant 0.000000e+00 : f32
    %19 = vector.broadcast %cst_11 : f32 to vector<2x128xf32>
    %20 = arith.maximumf %18, %19 : vector<2x128xf32>
    %21 = arith.addf %13, %20 : vector<2x128xf32>
    %c312 = arith.constant 312 : index
    %c0_12 = arith.constant 0 : index
    %22 = vector.load %arg1[%c312, %c0_12] : memref<840x128xf32, #tpu.memory_space<vmem>>, vector<128x128xf32>
    %c698 = arith.constant 698 : index
    %c0_13 = arith.constant 0 : index
    %23 = vector.load %arg1[%c698, %c0_13] : memref<840x128xf32, #tpu.memory_space<vmem>>, vector<1x128xf32>
    %cst_14 = arith.constant dense<0.000000e+00> : vector<2x128xf32>
    %24 = tpu.matmul %21, %22, %cst_14 {dimension_numbers = #tpu.dot_dimension_numbers<[1], [0], [0], [1], [0, 0, 1, 1], [], []>} : vector<2x128xf32>, vector<128x128xf32>, vector<2x128xf32> -> vector<2x128xf32>
    %25 = vector.broadcast %23 : vector<1x128xf32> to vector<2x128xf32>
    %26 = arith.addf %24, %25 : vector<2x128xf32>
    %cst_15 = arith.constant 0.000000e+00 : f32
    %27 = vector.broadcast %cst_15 : f32 to vector<2x128xf32>
    %28 = arith.maximumf %26, %27 : vector<2x128xf32>
    %29 = arith.addf %21, %28 : vector<2x128xf32>
    %c440 = arith.constant 440 : index
    %c0_16 = arith.constant 0 : index
    %30 = vector.load %arg1[%c440, %c0_16] : memref<840x128xf32, #tpu.memory_space<vmem>>, vector<128x128xf32>
    %c699 = arith.constant 699 : index
    %c0_17 = arith.constant 0 : index
    %31 = vector.load %arg1[%c699, %c0_17] : memref<840x128xf32, #tpu.memory_space<vmem>>, vector<1x128xf32>
    %cst_18 = arith.constant dense<0.000000e+00> : vector<2x128xf32>
    %32 = tpu.matmul %29, %30, %cst_18 {dimension_numbers = #tpu.dot_dimension_numbers<[1], [0], [0], [1], [0, 0, 1, 1], [], []>} : vector<2x128xf32>, vector<128x128xf32>, vector<2x128xf32> -> vector<2x128xf32>
    %33 = vector.broadcast %31 : vector<1x128xf32> to vector<2x128xf32>
    %34 = arith.addf %32, %33 : vector<2x128xf32>
    %cst_19 = arith.constant 0.000000e+00 : f32
    %35 = vector.broadcast %cst_19 : f32 to vector<2x128xf32>
    %36 = arith.maximumf %34, %35 : vector<2x128xf32>
    %37 = arith.addf %29, %36 : vector<2x128xf32>
    %c568 = arith.constant 568 : index
    %c0_20 = arith.constant 0 : index
    %38 = vector.load %arg1[%c568, %c0_20] : memref<840x128xf32, #tpu.memory_space<vmem>>, vector<128x128xf32>
    %c700 = arith.constant 700 : index
    %c0_21 = arith.constant 0 : index
    %39 = vector.load %arg1[%c700, %c0_21] : memref<840x128xf32, #tpu.memory_space<vmem>>, vector<1x128xf32>
    %cst_22 = arith.constant dense<0.000000e+00> : vector<2x128xf32>
    %40 = tpu.matmul %37, %38, %cst_22 {dimension_numbers = #tpu.dot_dimension_numbers<[1], [0], [0], [1], [0, 0, 1, 1], [], []>} : vector<2x128xf32>, vector<128x128xf32>, vector<2x128xf32> -> vector<2x128xf32>
    %41 = vector.broadcast %39 : vector<1x128xf32> to vector<2x128xf32>
    %42 = arith.addf %40, %41 : vector<2x128xf32>
    %cst_23 = arith.constant 0.000000e+00 : f32
    %43 = vector.broadcast %cst_23 : f32 to vector<2x128xf32>
    %44 = arith.maximumf %42, %43 : vector<2x128xf32>
    %45 = arith.addf %37, %44 : vector<2x128xf32>
    %c704 = arith.constant 704 : index
    %c0_24 = arith.constant 0 : index
    %46 = vector.load %arg1[%c704, %c0_24] : memref<840x128xf32, #tpu.memory_space<vmem>>, vector<128x128xf32>
    %c832 = arith.constant 832 : index
    %c0_25 = arith.constant 0 : index
    %47 = vector.load %arg1[%c832, %c0_25] : memref<840x128xf32, #tpu.memory_space<vmem>>, vector<1x128xf32>
    %cst_26 = arith.constant dense<0.000000e+00> : vector<2x128xf32>
    %48 = tpu.matmul %45, %46, %cst_26 {dimension_numbers = #tpu.dot_dimension_numbers<[1], [0], [0], [1], [0, 0, 1, 1], [], []>} : vector<2x128xf32>, vector<128x128xf32>, vector<2x128xf32> -> vector<2x128xf32>
    %49 = vector.broadcast %47 : vector<1x128xf32> to vector<2x128xf32>
    %50 = arith.addf %48, %49 : vector<2x128xf32>
    %cst_27 = arith.constant 5.000000e-01 : f32
    %51 = vector.broadcast %cst_27 : f32 to vector<2x128xf32>
    %52 = arith.mulf %51, %50 : vector<2x128xf32>
    %53 = math.tanh %52 : vector<2x128xf32>
    %cst_28 = arith.constant 1.000000e+00 : f32
    %54 = vector.broadcast %cst_28 : f32 to vector<2x128xf32>
    %55 = arith.addf %53, %54 : vector<2x128xf32>
    %cst_29 = arith.constant 5.000000e-01 : f32
    %56 = vector.broadcast %cst_29 : f32 to vector<2x128xf32>
    %57 = arith.mulf %56, %55 : vector<2x128xf32>
    %58 = vector.extract_strided_slice %57 {offsets = [0, 0], sizes = [2, 16], strides = [1, 1]} : vector<2x128xf32> to vector<2x16xf32>
    %c0_30 = arith.constant 0 : index
    %c0_31 = arith.constant 0 : index
    %59 = vector.load %arg2[%c0_30, %c0_31] : memref<2x16xf32, #tpu.memory_space<vmem>>, vector<2x16xf32>
    tpu.vector_store %arg2[%c0_30, %c0_31], %58 {strides = array<i32>} : memref<2x16xf32, #tpu.memory_space<vmem>>, vector<2x16xf32>,
    %60 = vector.extract_strided_slice %57 {offsets = [0, 16], sizes = [2, 8], strides = [1, 1]} : vector<2x128xf32> to vector<2x8xf32>
    %c0_32 = arith.constant 0 : index
    %c0_33 = arith.constant 0 : index
    %61 = vector.load %arg3[%c0_32, %c0_33] : memref<2x8xf32, #tpu.memory_space<vmem>>, vector<2x8xf32>
    tpu.vector_store %arg3[%c0_32, %c0_33], %60 {strides = array<i32>} : memref<2x8xf32, #tpu.memory_space<vmem>>, vector<2x8xf32>,
    return
  }
}

</mosaic_0001>

<bundles_post_ra>
// kernel: mtfnn_forward.1
= control target key start
LH: loop header
LB: loop body
LE: loop exit
PB: predicated region body
PF: predicated region fallthrough
CT: control target
= control target key end

     0   :  { %9 = vsyncpa [#allocation3], 0  ;;  %s1432_s0 = inlined_call_operand.hbm [shape: f32[2,48], index: 0, kind: input, shape index: {}]   ;;  %s1433_s1 = inlined_call_operand.hbm [shape: f32[840,128], index: 1, kind: input, shape index: {}]   ;;  %s1434_s2 = inlined_call_operand.vmem [shape: f32[2,16], index: 2, kind: output, shape index: {0}]   ;;  %s1435_s3 = inlined_call_operand.hbm [shape: f32[2,8], index: 3, kind: output, shape index: {1}]  }
   0x1   :  { %10 = vsyncpa [#allocation6], 0 }
   0x2   :  { %11 = vsyncpa [#allocation4], 0  ;;  %s1292_s12 = smov [#allocation2]   ;;  %s1293_s14 = smov [#allocation5]  }
   0x3   :  { %s18_s13 = sshll.u32 %s1292_s12, 4  ;;  %s27_s15 = sshll.u32 %s1293_s14, 4  ;;  %s19_s13 = int_to_ptr.vmem [resolvable:$true] %s18_s13  ;;  %s1321_s15 = int_to_ptr.vmem [resolvable:$true] %s27_s15 }
   0x4   :  { %s1220_s18 = scalar_lea.hbm %s1432_s0, 32 }
   0x5   :  { %p1221_p0 = scmp.ne.s32.totalorder %s1432_s0, %s1220_s18  ;;  %p1224_p1 = scmp.lt.u32.totalorder %s1220_s18, %s1432_s0 }
   0x7   :  { %p1226_p2 = pnand %p1224_p1, %p1221_p0 }
   0x9   :  { %1229 = shalt.err (!%p1226_p2)
}
   0xa   :  { %s1230_s23 = scalar_lea.vmem %s19_s13, 32  ;;  %p1235_p4 = scmp.lt.s32.totalorder %s19_s13, %s19_s13 }
   0xb   :  { %p1231_p3 = scmp.ne.s32.totalorder %s19_s13, %s1230_s23  ;;  %p1236_p5 = scmp.lt.s32.totalorder %s1230_s23, %s1230_s23 }
   0xd   :  { %p1237_p6 = por %p1236_p5, %p1235_p4 }
   0xf   :  { %p1238_p7 = pnand %p1237_p6, %p1231_p3 }
  0x11   :  { %1241 = shalt.err (!%p1238_p7)
}
  0x12   :  { %21 = dma.hbm_to_vmem [thread:$0]  %s1432_s0, 32, %s19_s13, [#allocation3]  }
  0x13   :  { %s1242_s28 = scalar_lea.hbm %s1433_s1, 13440 }
  0x14   :  { %p1243_p8 = scmp.ne.s32.totalorder %s1433_s1, %s1242_s28  ;;  %p1246_p9 = scmp.lt.u32.totalorder %s1242_s28, %s1433_s1 }
  0x16   :  { %p1248_p10 = pnand %p1246_p9, %p1243_p8 }
  0x18   :  { %1251 = shalt.err (!%p1248_p10)
}
  0x19   :  { %s1252_s6 = scalar_lea.vmem %s1321_s15, 13440  ;;  %p1257_p12 = scmp.lt.s32.totalorder %s1321_s15, %s1321_s15 }
  0x1a   :  { %p1253_p11 = scmp.ne.s32.totalorder %s1321_s15, %s1252_s6  ;;  %p1258_p13 = scmp.lt.s32.totalorder %s1252_s6, %s1252_s6 }
  0x1c   :  { %p1259_p0 = por %p1258_p13, %p1257_p12 }
  0x1e   :  { %p1260_p1 = pnand %p1259_p0, %p1253_p11 }
  0x20   :  { %1263 = shalt.err (!%p1260_p1)
}
  0x21   :  { %s1294_s0 = smov 128   ;;  %s1295_s7 = smov 8  }
  0x22   :  { %33 = dma.hbm_to_vmem [thread:$0]  %s1433_s1, 13440, %s1321_s15, [#allocation6], %s1294_s0, %s1294_s0, %s1295_s7  }
  0x23   :  { %1286 = dma.done.wait [#allocation3], 32  }
  0x24   :  { %1287 = vsyncadd [#allocation3], 4294967264 }
  0x25   :  { %1288 = dma.done.wait [#allocation6], 13440  }
  0x26   :  { %1289 = vsyncadd [#allocation6], 4294953856  ;;  %v1296_v0 = vmov 0.0|0.0   ;;  %vm1297_vm0 = vmmov 0   ;;  %v1298_v1 = vmov 0.0   ;;  %v40_v2 = vld [vmem:[#allocation5] sm:$0xff] }
  0x27   :  { %1056 = vmatprep.subr.bf16.mxu0 %v1296_v0  ;;  %843 = vmatprep.mubr.msk.f32.mxu0 %vm1297_vm0, %v1298_v1  ;;  %v41_v3 = vld [vmem:[#allocation5 + $0x8] sm:$0xff]  ;;  %v42_v4 = vld [vmem:[#allocation5 + $0x10] sm:$0xff]  ;;  %v43_v6 = vld [vmem:[#allocation5 + $0x18] sm:$0xff]  ;;  %vm52_vm1 = vcmask 392192   ;;  %vm686_vm2 = vcmask 123904   ;;  %s1299_s11 = smov 112  }
  0x28   :  { %1065 = vmatprep.subr.bf16.mxu1 %v1296_v0  ;;  %878 = vmatprep.mubr.msk.f32.mxu1 %vm1297_vm0, %v1298_v1  ;;  %v1057_v5 = vpack.c.bf16 %v41_v3, %v40_v2  ;;  %v126_v7 = vld [vmem:[#allocation5 + $0x38] sm:$0xff]  ;;  %v127_v8 = vld [vmem:[#allocation5 + $0x40] sm:$0xff]  ;;  %v1060_v9 = vpack.c.bf16 %v43_v6, %v42_v4  ;;  %v128_v11 = vld [vmem:[#allocation5 + $0x48] sm:$0xff]  ;;  %s1300_s12 = smov [#allocation7]   ;;  %vm692_vm3 = vcmask 58368  }
  0x29   :  { %v1066_v10 = vpack.c.bf16 %v127_v8, %v126_v7  ;;  %v129_v12 = vld [vmem:[#allocation5 + $0x50] sm:$0xff]  ;;  %v44_v13 = vld [vmem:[#allocation5 + $0x20] sm:$0xff]  ;;  %v45_v14 = vld [vmem:[#allocation5 + $0x28] sm:$0xff]  ;;  %s702_s13 = sshll.u32 %s1300_s12, 4  ;;  %s703_s13 = int_to_ptr.vmem [resolvable:$true] %s702_s13 }
  0x2a   :  { %1058 = vmatpush3.bf16.msra.mxu0 %v1057_v5  ;;  %v1069_v15 = vpack.c.bf16 %v129_v12, %v128_v11  ;;  %v130_v16 = vld [vmem:[#allocation5 + $0x58] sm:$0xff]  ;;  %v131_v17 = vld [vmem:[#allocation5 + $0x60] sm:$0xff]  ;;  %v1063_v18 = vpack.c.bf16 %v45_v14, %v44_v13  ;;  %v132_v20 = vld [vmem:[#allocation5 + $0x68] sm:$0xff]  ;;  %s1264_s14 = scalar_lea.vmem %s703_s13, 32  ;;  %p1269_p3 = scmp.lt.s32.totalorder %s703_s13, %s703_s13 }
  0x2b   :  { %1059 = vmatprep.subr.bf16.mxu0 %v1296_v0  ;;  %1067 = vmatpush3.bf16.msra.mxu1 %v1066_v10  ;;  %v1072_v19 = vpack.c.bf16 %v131_v17, %v130_v16  ;;  %v133_v21 = vld [vmem:[#allocation5 + $0x70] sm:$0xff]  ;;  %v47_v22 = vld [vmem:[#allocation2] sm:$0x3]  ;;  %v135_v25 = vld [vmem:[#allocation5 + $0x80] sm:$0xff]  ;;  %p1265_p2 = scmp.ne.s32.totalorder %s703_s13, %s1264_s14  ;;  %p1270_p4 = scmp.lt.s32.totalorder %s1264_s14, %s1264_s14 }
  0x2c   :  { %1068 = vmatprep.subr.bf16.mxu1 %v1296_v0  ;;  %v1075_v23 = vpack.c.bf16 %v133_v21, %v132_v20  ;;  %v134_v24 = vld [vmem:[#allocation5 + $0x78] sm:$0xff]  ;;  %v136_v27 = vld [vmem:[#allocation5 + $0x88] sm:$0xff]  ;;  %v137_v28 = vld [vmem:[#allocation5 + $0x90] sm:$0xff] }
  0x2d   :  { %v1078_v26 = vpack.c.bf16 %v135_v25, %v134_v24  ;;  %v1081_v29 = vpack.c.bf16 %v137_v28, %v136_v27  ;;  %v138_v30 = vld [vmem:[#allocation5 + $0x98] sm:$0xff]  ;;  %v139_v31 = vld [vmem:[#allocation5 + $0xa0] sm:$0xff]  ;;  %v140_v33 = vld [vmem:[#allocation5 + $0xa8] sm:$0xff]  ;;  %p1271_p5 = por %p1270_p4, %p1269_p3 }
  0x2e   :  { %1061 = vmatpush3.bf16.msra.mxu0 %v1060_v9  ;;  %v1084_v32 = vpack.c.bf16 %v139_v31, %v138_v30  ;;  %v141_v34 = vld [vmem:[#allocation5 + $0xb0] sm:$0xff]  ;;  %v219_v36 = vld [vmem:[#allocation5 + $0xb8] sm:$0xff]  ;;  %v220_v37 = vld [vmem:[#allocation5 + $0xc0] sm:$0xff] }
  0x2f   :  { %1062 = vmatprep.subr.bf16.mxu0 %v1296_v0  ;;  %1070 = vmatpush3.bf16.msra.mxu1 %v1069_v15  ;;  %v1087_v35 = vpack.c.bf16 %v141_v34, %v140_v33  ;;  %v221_v38 = vld [vmem:[#allocation5 + $0xc8] sm:$0xff]  ;;  %v1090_v39 = vpack.c.bf16 %v220_v37, %v219_v36  ;;  %v222_v40 = vld [vmem:[#allocation5 + $0xd0] sm:$0xff]  ;;  %v223_v42 = vld [vmem:[#allocation5 + $0xd8] sm:$0xff]  ;;  %p1272_p6 = pnand %p1271_p5, %p1265_p2 }
  0x30   :  { %1071 = vmatprep.subr.bf16.mxu1 %v1296_v0  ;;  %v1093_v41 = vpack.c.bf16 %v222_v40, %v221_v38  ;;  %v224_v43 = vld [vmem:[#allocation5 + $0xe0] sm:$0xff]  ;;  %v225_v45 = vld [vmem:[#allocation5 + $0xe8] sm:$0xff]  ;;  %v226_v46 = vld [vmem:[#allocation5 + $0xf0] sm:$0xff] }
  0x31   :  { %v1096_v44 = vpack.c.bf16 %v224_v43, %v223_v42  ;;  %v1099_v47 = vpack.c.bf16 %v226_v46, %v225_v45  ;;  %v227_v48 = vld [vmem:[#allocation5 + $0xf8] sm:$0xff]  ;;  %v228_v49 = vld [vmem:[#allocation5 + $0x100] sm:$0xff]  ;;  %v229_v51 = vld [vmem:[#allocation5 + $0x108] sm:$0xff] }
  0x32   :  { %1064 = vmatpush3.bf16.msra.mxu0 %v1063_v18  ;;  %v1102_v50 = vpack.c.bf16 %v228_v49, %v227_v48  ;;  %v230_v52 = vld [vmem:[#allocation5 + $0x110] sm:$0xff]  ;;  %v231_v58 = vld [vmem:[#allocation5 + $0x118] sm:$0xff]  ;;  %v232_v59 = vld [vmem:[#allocation5 + $0x120] sm:$0xff] }
  0x33   :  { %1089 = vmatprep.subr.bf16.mxu0 %v1296_v0  ;;  %1073 = vmatpush3.bf16.msra.mxu1 %v1072_v19  ;;  %v1105_v53 = vpack.c.bf16 %v230_v52, %v229_v51  ;;  %v714_v54 = vld [vmem:[#allocation5 + $0x30] ss:$0 sm:$0xff]  ;;  %v1108_v60 = vpack.c.bf16 %v232_v59, %v231_v58  ;;  %v233_v61 = vld [vmem:[#allocation5 + $0x128] sm:$0xff]  ;;  %v312_v2 = vld [vmem:[#allocation5 + $0x138] sm:$0xff] }
  0x34   :  { %1074 = vmatprep.subr.bf16.mxu1 %v1296_v0  ;;  %v234_v62 = vld [vmem:[#allocation5 + $0x130] sm:$0xff]  ;;  %v313_v3 = vld [vmem:[#allocation5 + $0x140] sm:$0xff]  ;;  %v314_v4 = vld [vmem:[#allocation5 + $0x148] sm:$0xff] }
  0x35   :  { %844 = vmatmul.mubr.msk.f32.vlgmr.msra.gmra.mrb[0].mxu0 %vm52_vm1, %v47_v22  ;;  %v1111_v63 = vpack.c.bf16 %v234_v62, %v233_v61  ;;  %v1114_v5 = vpack.c.bf16 %v313_v3, %v312_v2  ;;  %v315_v6 = vld [vmem:[#allocation5 + $0x150] sm:$0xff]  ;;  %v316_v8 = vld [vmem:[#allocation5 + $0x158] sm:$0xff]  ;;  %v317_v9 = vld [vmem:[#allocation5 + $0x160] sm:$0xff] }
  0x36   :  { %913 = vmatprep.mubr.msk.f32.mxu0 %vm1297_vm0, %v1298_v1  ;;  %1091 = vmatpush3.bf16.msra.mxu0 %v1090_v39  ;;  %v1117_v7 = vpack.c.bf16 %v315_v6, %v314_v4  ;;  %v1120_v10 = vpack.c.bf16 %v317_v9, %v316_v8  ;;  %v318_v11 = vld [vmem:[#allocation5 + $0x168] sm:$0xff]  ;;  %v319_v12 = vld [vmem:[#allocation5 + $0x170] sm:$0xff]  ;;  %v320_v14 = vld [vmem:[#allocation5 + $0x178] sm:$0xff] }
  0x37   :  { %1076 = vmatpush3.bf16.msra.mxu1 %v1075_v23  ;;  %1092 = vmatprep.subr.bf16.mxu0 %v1296_v0  ;;  %v1123_v13 = vpack.c.bf16 %v319_v12, %v318_v11  ;;  %v321_v15 = vld [vmem:[#allocation5 + $0x180] sm:$0xff]  ;;  %v322_v17 = vld [vmem:[#allocation5 + $0x188] sm:$0xff]  ;;  %v323_v18 = vld [vmem:[#allocation5 + $0x190] sm:$0xff] }
  0x38   :  { %1077 = vmatprep.subr.bf16.mxu1 %v1296_v0  ;;  %v1126_v16 = vpack.c.bf16 %v321_v15, %v320_v14  ;;  %v1129_v19 = vpack.c.bf16 %v323_v18, %v322_v17  ;;  %v716_v20 = vld [vmem:[#allocation5 + $0x2b8] ss:$0 sm:$0xff]  ;;  %v325_v27 = vld [vmem:[#allocation5 + $0x1a0] sm:$0xff]  ;;  %v327_v30 = vld [vmem:[#allocation5 + $0x1b0] sm:$0xff] }
  0x39   :  { %v406_v33 = vld [vmem:[#allocation5 + $0x1c0] sm:$0xff]  ;;  %v407_v34 = vld [vmem:[#allocation5 + $0x1c8] sm:$0xff]  ;;  %v408_v36 = vld [vmem:[#allocation5 + $0x1d0] sm:$0xff] }
  0x3a   :  { %1094 = vmatpush3.bf16.msra.mxu0 %v1093_v41  ;;  %v1141_v37 = vpack.c.bf16 %v408_v36, %v407_v34  ;;  %v409_v38 = vld [vmem:[#allocation5 + $0x1d8] sm:$0xff]  ;;  %v410_v39 = vld [vmem:[#allocation5 + $0x1e0] sm:$0xff]  ;;  %v411_v41 = vld [vmem:[#allocation5 + $0x1e8] sm:$0xff] }
  0x3b   :  { %1079 = vmatpush3.bf16.msra.mxu1 %v1078_v26  ;;  %1095 = vmatprep.subr.bf16.mxu0 %v1296_v0  ;;  %v324_v26 = vld [vmem:[#allocation5 + $0x198] sm:$0xff]  ;;  %v1144_v40 = vpack.c.bf16 %v410_v39, %v409_v38  ;;  %v412_v42 = vld [vmem:[#allocation5 + $0x1f0] sm:$0xff]  ;;  %v414_v45 = vld [vmem:[#allocation5 + $0x200] sm:$0xff] }
  0x3c   :  { %1080 = vmatprep.subr.bf16.mxu1 %v1296_v0  ;;  %v1132_v28 = vpack.c.bf16 %v325_v27, %v324_v26  ;;  %v1147_v43 = vpack.c.bf16 %v412_v42, %v411_v41  ;;  %v416_v48 = vld [vmem:[#allocation5 + $0x210] sm:$0xff]  ;;  %v419_v59 = vld [vmem:[#allocation5 + $0x228] sm:$0xff]  ;;  %v498_v62 = vld [vmem:[#allocation5 + $0x238] sm:$0xff] }
  0x3d   :  { %v500_v2 = vld [vmem:[#allocation5 + $0x248] sm:$0xff]  ;;  %v501_v4 = vld [vmem:[#allocation5 + $0x250] sm:$0xff]  ;;  %v502_v6 = vld [vmem:[#allocation5 + $0x258] sm:$0xff] }
  0x3e   :  { %1097 = vmatpush3.bf16.msra.mxu0 %v1096_v44  ;;  %v413_v44 = vld [vmem:[#allocation5 + $0x1f8] sm:$0xff]  ;;  %v504_v9 = vld [vmem:[#allocation5 + $0x268] sm:$0xff]  ;;  %v597_v38 = vld [vmem:[#allocation5 + $0x2f0] sm:$0xff] }
  0x3f   :  { %1082 = vmatpush3.bf16.msra.mxu1 %v1081_v29  ;;  %1098 = vmatprep.subr.bf16.mxu0 %v1296_v0  ;;  %v326_v29 = vld [vmem:[#allocation5 + $0x1a8] sm:$0xff]  ;;  %v1150_v46 = vpack.c.bf16 %v414_v45, %v413_v44  ;;  %v506_v12 = vld [vmem:[#allocation5 + $0x278] sm:$0xff]  ;;  %v599_v41 = vld [vmem:[#allocation5 + $0x300] sm:$0xff] }
  0x40   :  { %1083 = vmatprep.subr.bf16.mxu1 %v1296_v0  ;;  %v1135_v31 = vpack.c.bf16 %v327_v30, %v326_v29  ;;  %v508_v15 = vld [vmem:[#allocation5 + $0x288] sm:$0xff]  ;;  %v718_v18 = vld [vmem:[#allocation5 + $0x2ba] ss:$0 sm:$0xff]  ;;  %v591_v30 = vld [vmem:[#allocation5 + $0x2c0] sm:$0xff] }
  0x41   :  { %v512_v27 = vld [vmem:[#allocation5 + $0x2a8] sm:$0xff]  ;;  %v594_v34 = vld [vmem:[#allocation5 + $0x2d8] sm:$0xff]  ;;  %v601_v44 = vld [vmem:[#allocation5 + $0x310] sm:$0xff] }
  0x42   :  { %1100 = vmatpush3.bf16.msra.mxu0 %v1099_v47  ;;  %v415_v47 = vld [vmem:[#allocation5 + $0x208] sm:$0xff]  ;;  %v598_v39 = vld [vmem:[#allocation5 + $0x2f8] sm:$0xff] }
  0x43   :  { %1085 = vmatpush3.bf16.msra.mxu1 %v1084_v32  ;;  %1101 = vmatprep.subr.bf16.mxu0 %v1296_v0  ;;  %v405_v32 = vld [vmem:[#allocation5 + $0x1b8] sm:$0xff]  ;;  %v1153_v49 = vpack.c.bf16 %v416_v48, %v415_v47  ;;  %v596_v36 = vld [vmem:[#allocation5 + $0x2e8] sm:$0xff] }
  0x44   :  { %1086 = vmatprep.subr.bf16.mxu1 %v1296_v0  ;;  %v600_v42 = vld [vmem:[#allocation5 + $0x308] sm:$0xff]  ;;  %v602_v45 = vld [vmem:[#allocation5 + $0x318] sm:$0xff] }
  0x45   :  { %v719_v47 = vld [vmem:[#allocation5 + $0x2bb] ss:$0 sm:$0xff] }
  0x46   :  { %1103 = vmatpush3.bf16.msra.mxu0 %v1102_v50  ;;  %v717_v50 = vld [vmem:[#allocation5 + $0x2b9] ss:$0 sm:$0xff] }
  0x47   :  { %1088 = vmatpush3.bf16.msra.mxu1 %v1087_v35  ;;  %1104 = vmatprep.subr.bf16.mxu0 %v1296_v0  ;;  %v1138_v35 = vpack.c.bf16 %v406_v33, %v405_v32  ;;  %v593_v32 = vld [vmem:[#allocation5 + $0x2d0] sm:$0xff] }
  0x48   :  { %1113 = vmatprep.subr.bf16.mxu1 %v1296_v0 }
  0x4a   :  { %1106 = vmatpush3.bf16.msra.mxu0 %v1105_v53 }
  0x4b   :  { %1107 = vmatprep.subr.bf16.mxu0 %v1296_v0 }
  0x4e   :  { %1109 = vmatpush3.bf16.msra.mxu0 %v1108_v60  ;;  %v420_v60 = vld [vmem:[#allocation5 + $0x230] sm:$0xff] }
  0x4f   :  { %1110 = vmatprep.subr.bf16.mxu0 %v1296_v0  ;;  %v1159_v61 = vpack.c.bf16 %v420_v60, %v419_v59  ;;  %v720_v59 = vld [vmem:[#allocation5 + $0x2bc] ss:$0 sm:$0xff] }
  0x52   :  { %1112 = vmatpush3.bf16.msra.mxu0 %v1111_v63  ;;  %v499_v63 = vld [vmem:[#allocation5 + $0x240] sm:$0xff] }
  0x53   :  { %1137 = vmatprep.subr.bf16.mxu0 %v1296_v0  ;;  %v1162_v3 = vpack.c.bf16 %v499_v63, %v498_v62 }
 0x108   :  { %v122_v55 = vpop.f32.mrb[0].mxu0 }
 0x109   :  { %v123_v56 = vadd.f32 %v714_v54, %v122_v55  ;;  %v845_v57 = vpop.f32.mrb[1].mxu0 }
 0x10a   :  { %v418_v57 = vld [vmem:[#allocation5 + $0x220] sm:$0xff] }
 0x10b   :  { %879 = vmatmul.mubr.f32.vlgmr.msra.gmra.mrb[0].mxu1 %v123_v56 }
 0x10c   :  { %948 = vmatprep.mubr.msk.f32.mxu1 %vm1297_vm0, %v1298_v1  ;;  %1115 = vmatpush3.bf16.msra.mxu1 %v1114_v5  ;;  %v1165_v5 = vpack.c.bf16 %v501_v4, %v500_v2 }
 0x10d   :  { %1116 = vmatprep.subr.bf16.mxu1 %v1296_v0 }
 0x110   :  { %1118 = vmatpush3.bf16.msra.mxu1 %v1117_v7  ;;  %v503_v7 = vld [vmem:[#allocation5 + $0x260] sm:$0xff] }
 0x111   :  { %1119 = vmatprep.subr.bf16.mxu1 %v1296_v0  ;;  %v1168_v8 = vpack.c.bf16 %v503_v7, %v502_v6 }
 0x114   :  { %1121 = vmatpush3.bf16.msra.mxu1 %v1120_v10  ;;  %v505_v10 = vld [vmem:[#allocation5 + $0x270] sm:$0xff] }
 0x115   :  { %1122 = vmatprep.subr.bf16.mxu1 %v1296_v0  ;;  %v1171_v11 = vpack.c.bf16 %v505_v10, %v504_v9 }
 0x118   :  { %1124 = vmatpush3.bf16.msra.mxu1 %v1123_v13  ;;  %v507_v13 = vld [vmem:[#allocation5 + $0x280] sm:$0xff] }
 0x119   :  { %1125 = vmatprep.subr.bf16.mxu1 %v1296_v0  ;;  %v1174_v14 = vpack.c.bf16 %v507_v13, %v506_v12 }
 0x11c   :  { %1127 = vmatpush3.bf16.msra.mxu1 %v1126_v16  ;;  %v509_v16 = vld [vmem:[#allocation5 + $0x290] sm:$0xff] }
 0x11d   :  { %1128 = vmatprep.subr.bf16.mxu1 %v1296_v0  ;;  %v1177_v17 = vpack.c.bf16 %v509_v16, %v508_v15 }
 0x120   :  { %1130 = vmatpush3.bf16.msra.mxu1 %v1129_v19 }
 0x121   :  { %1131 = vmatprep.subr.bf16.mxu1 %v1296_v0 }
 0x124   :  { %1133 = vmatpush3.bf16.msra.mxu1 %v1132_v28  ;;  %v513_v28 = vld [vmem:[#allocation5 + $0x2b0] sm:$0xff] }
 0x125   :  { %1134 = vmatprep.subr.bf16.mxu1 %v1296_v0  ;;  %v1183_v29 = vpack.c.bf16 %v513_v28, %v512_v27 }
 0x128   :  { %1136 = vmatpush3.bf16.msra.mxu1 %v1135_v31  ;;  %v592_v31 = vld [vmem:[#allocation5 + $0x2c8] sm:$0xff] }
 0x129   :  { %1161 = vmatprep.subr.bf16.mxu1 %v1296_v0  ;;  %v1186_v33 = vpack.c.bf16 %v592_v31, %v591_v30 }
 0x1de   :  { %v213_v21 = vpop.f32.mrb[0].mxu1 }
 0x1df   :  { %v214_v22 = vadd.f32 %v716_v20, %v213_v21  ;;  %v880_v23 = vpop.f32.mrb[1].mxu1 }
 0x1e1   :  { %v217_v24 = vmax.f32 %v214_v22, 0.0 }
 0x1e3   :  { %v218_v25 = vadd.f32 %v217_v24, %v123_v56  ;;  %v417_v56 = vld [vmem:[#allocation5 + $0x218] sm:$0xff] }
 0x1e4   :  { %v1156_v58 = vpack.c.bf16 %v418_v57, %v417_v56  ;;  %v510_v24 = vld [vmem:[#allocation5 + $0x298] sm:$0xff]  ;;  %v605_v56 = vld [vmem:[#allocation5 + $0x330] sm:$0xff] }
 0x1e5   :  { %914 = vmatmul.mubr.f32.vlgmr.msra.gmra.mrb[2].mxu0 %v218_v25  ;;  %v606_v57 = vld [vmem:[#allocation5 + $0x338] sm:$0xff] }
 0x1e6   :  { %983 = vmatprep.mubr.msk.f32.mxu0 %vm1297_vm0, %v1298_v1  ;;  %1139 = vmatpush3.bf16.msra.mxu0 %v1138_v35  ;;  %v1189_v35 = vpack.c.bf16 %v594_v34, %v593_v32 }
 0x1e7   :  { %1140 = vmatprep.subr.bf16.mxu0 %v1296_v0 }
 0x1ea   :  { %1142 = vmatpush3.bf16.msra.mxu0 %v1141_v37 }
 0x1eb   :  { %1143 = vmatprep.subr.bf16.mxu0 %v1296_v0 }
 0x1ee   :  { %1145 = vmatpush3.bf16.msra.mxu0 %v1144_v40  ;;  %v1195_v40 = vpack.c.bf16 %v598_v39, %v597_v38 }
 0x1ef   :  { %1146 = vmatprep.subr.bf16.mxu0 %v1296_v0 }
 0x1f2   :  { %1148 = vmatpush3.bf16.msra.mxu0 %v1147_v43  ;;  %v1198_v43 = vpack.c.bf16 %v600_v42, %v599_v41 }
 0x1f3   :  { %1149 = vmatprep.subr.bf16.mxu0 %v1296_v0 }
 0x1f6   :  { %1151 = vmatpush3.bf16.msra.mxu0 %v1150_v46  ;;  %v1201_v46 = vpack.c.bf16 %v602_v45, %v601_v44 }
 0x1f7   :  { %1152 = vmatprep.subr.bf16.mxu0 %v1296_v0 }
 0x1fa   :  { %1154 = vmatpush3.bf16.msra.mxu0 %v1153_v49 }
 0x1fb   :  { %1155 = vmatprep.subr.bf16.mxu0 %v1296_v0 }
 0x1fe   :  { %1157 = vmatpush3.bf16.msra.mxu0 %v1156_v58  ;;  %v1207_v58 = vpack.c.bf16 %v606_v57, %v605_v56 }
 0x1ff   :  { %1158 = vmatprep.subr.bf16.mxu0 %v1296_v0 }
 0x202   :  { %1160 = vmatpush3.bf16.msra.mxu0 %v1159_v61 }
 0x203   :  { %1185 = vmatprep.subr.bf16.mxu0 %v1296_v0 }
 0x2b8   :  { %v306_v51 = vpop.f32.mrb[2].mxu0 }
 0x2b9   :  { %v307_v52 = vadd.f32 %v717_v50, %v306_v51  ;;  %v915_v53 = vpop.f32.mrb[3].mxu0 }
 0x2ba   :  { %v603_v53 = vld [vmem:[#allocation5 + $0x320] sm:$0xff] }
 0x2bb   :  { %v310_v54 = vmax.f32 %v307_v52, 0.0 }
 0x2bd   :  { %v311_v55 = vadd.f32 %v310_v54, %v218_v25  ;;  %v511_v25 = vld [vmem:[#allocation5 + $0x2a0] sm:$0xff]  ;;  %v604_v54 = vld [vmem:[#allocation5 + $0x328] sm:$0xff] }
 0x2be   :  { %v1180_v26 = vpack.c.bf16 %v511_v25, %v510_v24 }
 0x2bf   :  { %949 = vmatmul.mubr.f32.vlgmr.msra.gmra.mrb[2].mxu1 %v311_v55 }
 0x2c0   :  { %1018 = vmatprep.mubr.msk.f32.mxu1 %vm1297_vm0, %v1298_v1  ;;  %1163 = vmatpush3.bf16.msra.mxu1 %v1162_v3  ;;  %v721_v3 = vld [vmem:[#allocation5 + $0x340] ss:$0 sm:$0xff] }
 0x2c1   :  { %1164 = vmatprep.subr.bf16.mxu1 %v1296_v0 }
 0x2c4   :  { %1166 = vmatpush3.bf16.msra.mxu1 %v1165_v5 }
 0x2c5   :  { %1167 = vmatprep.subr.bf16.mxu1 %v1296_v0 }
 0x2c8   :  { %1169 = vmatpush3.bf16.msra.mxu1 %v1168_v8 }
 0x2c9   :  { %1170 = vmatprep.subr.bf16.mxu1 %v1296_v0 }
 0x2cc   :  { %1172 = vmatpush3.bf16.msra.mxu1 %v1171_v11 }
 0x2cd   :  { %1173 = vmatprep.subr.bf16.mxu1 %v1296_v0 }
 0x2d0   :  { %1175 = vmatpush3.bf16.msra.mxu1 %v1174_v14 }
 0x2d1   :  { %1176 = vmatprep.subr.bf16.mxu1 %v1296_v0 }
 0x2d4   :  { %1178 = vmatpush3.bf16.msra.mxu1 %v1177_v17 }
 0x2d5   :  { %1179 = vmatprep.subr.bf16.mxu1 %v1296_v0 }
 0x2d8   :  { %1181 = vmatpush3.bf16.msra.mxu1 %v1180_v26 }
 0x2d9   :  { %1182 = vmatprep.subr.bf16.mxu1 %v1296_v0 }
 0x2dc   :  { %1184 = vmatpush3.bf16.msra.mxu1 %v1183_v29 }
 0x392   :  { %v399_v19 = vpop.f32.mrb[2].mxu1 }
 0x393   :  { %v400_v20 = vadd.f32 %v718_v18, %v399_v19  ;;  %v950_v21 = vpop.f32.mrb[3].mxu1 }
 0x395   :  { %v403_v22 = vmax.f32 %v400_v20, 0.0 }
 0x397   :  { %v404_v23 = vadd.f32 %v403_v22, %v311_v55  ;;  %v1204_v55 = vpack.c.bf16 %v604_v54, %v603_v53 }
 0x399   :  { %984 = vmatmul.mubr.f32.vlgmr.msra.gmra.mrb[4].mxu0 %v404_v23 }
 0x39a   :  { %1053 = vmatprep.mubr.msk.f32.mxu0 %vm1297_vm0, %v1298_v1  ;;  %1187 = vmatpush3.bf16.msra.mxu0 %v1186_v33  ;;  %v595_v1 = vld [vmem:[#allocation5 + $0x2e0] sm:$0xff] }
 0x39b   :  { %1188 = vmatprep.subr.bf16.mxu0 %v1296_v0  ;;  %v1192_v37 = vpack.c.bf16 %v596_v36, %v595_v1 }
 0x39e   :  { %1190 = vmatpush3.bf16.msra.mxu0 %v1189_v35 }
 0x39f   :  { %1191 = vmatprep.subr.bf16.mxu0 %v1296_v0 }
 0x3a2   :  { %1193 = vmatpush3.bf16.msra.mxu0 %v1192_v37 }
 0x3a3   :  { %1194 = vmatprep.subr.bf16.mxu0 %v1296_v0 }
 0x3a6   :  { %1196 = vmatpush3.bf16.msra.mxu0 %v1195_v40 }
 0x3a7   :  { %1197 = vmatprep.subr.bf16.mxu0 %v1296_v0 }
 0x3aa   :  { %1199 = vmatpush3.bf16.msra.mxu0 %v1198_v43 }
 0x3ab   :  { %1200 = vmatprep.subr.bf16.mxu0 %v1296_v0 }
 0x3ae   :  { %1202 = vmatpush3.bf16.msra.mxu0 %v1201_v46 }
 0x3af   :  { %1203 = vmatprep.subr.bf16.mxu0 %v1296_v0 }
 0x3b2   :  { %1205 = vmatpush3.bf16.msra.mxu0 %v1204_v55 }
 0x3b3   :  { %1206 = vmatprep.subr.bf16.mxu0 %v1296_v0 }
 0x3b6   :  { %1208 = vmatpush3.bf16.msra.mxu0 %v1207_v58 }
 0x46c   :  { %v492_v48 = vpop.f32.mrb[4].mxu0 }
 0x46d   :  { %v493_v49 = vadd.f32 %v719_v47, %v492_v48  ;;  %v985_v50 = vpop.f32.mrb[5].mxu0 }
 0x46f   :  { %v496_v51 = vmax.f32 %v493_v49, 0.0 }
 0x471   :  { %v497_v52 = vadd.f32 %v496_v51, %v404_v23 }
 0x473   :  { %1019 = vmatmul.mubr.f32.vlgmr.msra.gmra.mrb[4].mxu1 %v497_v52 }
 0x546   :  { %v585_v60 = vpop.f32.mrb[4].mxu1 }
 0x547   :  { %v586_v61 = vadd.f32 %v720_v59, %v585_v60  ;;  %v1020_v62 = vpop.f32.mrb[5].mxu1 }
 0x549   :  { %v589_v63 = vmax.f32 %v586_v61, 0.0 }
 0x54b   :  { %v590_v2 = vadd.f32 %v589_v63, %v497_v52 }
 0x54d   :  { %1054 = vmatmul.mubr.f32.vlgmr.msra.gmra.mrb[6].mxu0 %v590_v2 }
 0x620   :  { %v678_v4 = vpop.f32.mrb[6].mxu0 }
 0x621   :  { %v679_v5 = vadd.f32 %v721_v3, %v678_v4  ;;  %v1055_v6 = vpop.f32.mrb[7].mxu0 }
 0x623   :  { %v682_v7 = vmul.f32 0.5, %v679_v5 }
 0x625   :  { %1218 = vtanh.f32 %v682_v7 }
 0x62f   :  { %v1219_v8 = vpop.eup %1218 }
 0x630   :  { %v684_v9 = vadd.f32 1.0, %v1219_v8 }
 0x632   :  { %v685_v0 = vmul.f32 0.5, %v684_v9 }
 0x634   :  { %687 = vst.msk [vmem:[%s1434_s2] sm:$0x3] %vm686_vm2, %v685_v0  ;;  %689 = vrot.lane.b32.xlu0 %v685_v0, %s1299_s11 }
 0x6a6   :  { %v690_v10 = vpop.permute.xlu0 %689 }
 0x6a7   :  { %693 = vst.msk [vmem:[#allocation7] sm:$0x3] %vm692_vm3, %v690_v10 }
 0x6a8   :  { %1275 = shalt.err (!%p1272_p6)
}
 0x6a9   :  { %s1276_s17 = scalar_lea.hbm %s1435_s3, 32 }
 0x6aa   :  { %p1277_p7 = scmp.ne.s32.totalorder %s1435_s3, %s1276_s17  ;;  %p1280_p8 = scmp.lt.u32.totalorder %s1276_s17, %s1435_s3 }
 0x6ac   :  { %p1282_p9 = pnand %p1280_p8, %p1277_p7 }
 0x6ae   :  { %1285 = shalt.err (!%p1282_p9)
}
 0x6af   :  { %705 = dma.vmem_to_hbm [thread:$0]  %s703_s13, 32, %s1435_s3, [#allocation4]  }
 0x6b0   :  { %1290 = dma.done.wait [#allocation4], 32  }
 0x6b1   :  { %1291 = vsyncadd [#allocation4], 4294967264 }
 0x6b2   :  { %711 = vsyncpa [#allocation3], 1 }
 0x6b3   :  { %712 = vsyncpa [#allocation6], 1 }
 0x6b4   :  { %713 = vsyncpa [#allocation4], 1 }

</bundles_post_ra>
